<compile_context>
chip_gen: v6e
topology: v6e:2x2x1
jax: 0.10.0
libtpu: 0.0.40
codegen_flags: <defaults>
</compile_context>

<pallas_src>
import functools

import jax
import jax.numpy as jnp
from jax import lax
from jax.experimental import pallas as pl
from jax.experimental.pallas import tpu as pltpu

_LANE = 128


def _round_up(v, m):
    return (v + m - 1) // m * m


def _device_caps():
    try:
        kind = jax.devices()[0].device_kind.lower()
    except Exception:
        kind = ""
    vmem_cap = (48 if "v7" in kind else 100) * 1024 * 1024   # bytes
    a_buffers = 3 if "v5" in kind else 2                      # Â pipeline depth
    return vmem_cap, a_buffers


_VMEM_CAP, _A_BUFFERS = _device_caps()
_VMEM_SPEC = pl.BlockSpec(memory_space=pltpu.MemorySpace.VMEM)


def _vmem_limit(nbytes):
    # computed from actual padded buffer sizes + headroom, clamped per-generation
    return int(min(_VMEM_CAP, max(8 * 1024 * 1024, int(nbytes * 1.25))))


def _a_block_spec(shape, index_map):
    if _A_BUFFERS == 2:
        return pl.BlockSpec(shape, index_map)
    try:
        return pl.BlockSpec(shape, index_map, pipeline_mode=pl.Buffered(_A_BUFFERS))
    except Exception:  # older jax without pipeline_mode / Buffered
        return pl.BlockSpec(shape, index_map)


def _row_tile(np_):
    for t in (512, 256, 128):
        if np_ % t == 0:
            return t
    return np_   # np_ is always a multiple of 128


# ---------------- Pallas kernels ----------------

def gcn_conv_kernel(a_ref, h_ref, w_ref, b_ref, o_ref):
    """One node-row tile:  relu( (Â_tile @ H) @ W + b )."""
    agg = jnp.dot(a_ref[...], h_ref[...], preferred_element_type=jnp.float32)
    out = jnp.dot(agg.astype(jnp.bfloat16), w_ref[...],
                  preferred_element_type=jnp.float32) + b_ref[...]
    o_ref[...] = jnp.maximum(out, 0.0).astype(jnp.bfloat16)


def gcn_agg_kernel(a_ref, h_ref, b_ref, o_ref):
    """Pre-projected variant (H already holds X @ W):  relu( Â_tile @ H + b )."""
    agg = jnp.dot(a_ref[...], h_ref[...], preferred_element_type=jnp.float32)
    o_ref[...] = jnp.maximum(agg + b_ref[...], 0.0).astype(jnp.bfloat16)


def link_head_kernel(h_ref, i0_ref, i1_ref, w3a_ref, w3b_ref, b3_ref, o_ref,
                     *, out_dim):
    """Pair gather (in-kernel one-hot selectors) + linear head + log_softmax."""
    h = h_ref[...]                                             # (Np, Fp) bf16
    mp = i0_ref.shape[0]
    np_ = h.shape[0]
    node = lax.broadcasted_iota(jnp.int32, (mp, np_), 1)
    s0 = (node == i0_ref[...]).astype(jnp.bfloat16)            # built in-kernel
    s1 = (node == i1_ref[...]).astype(jnp.bfloat16)            # (no HBM selectors)
    # gather-then-head (M << N); TODO(synk): flip to head-then-gather when M ~ N.
    z0 = jnp.dot(s0, h, preferred_element_type=jnp.float32)    # (Mp, Fp)
    z1 = jnp.dot(s1, h, preferred_element_type=jnp.float32)
    # [z0 | z1] @ W3 + b3 == z0 @ W3_top + z1 @ W3_bot + b3
    logits = (jnp.dot(z0.astype(jnp.bfloat16), w3a_ref[...],
                      preferred_element_type=jnp.float32)
              + jnp.dot(z1.astype(jnp.bfloat16), w3b_ref[...],
                        preferred_element_type=jnp.float32)
              + b3_ref[...])                                   # (Mp, Op) f32
    lane = lax.broadcasted_iota(jnp.int32, logits.shape, 1)
    logits = jnp.where(lane < out_dim, logits, -1e30)          # mask padded lanes
    m_ = jnp.max(logits, axis=-1, keepdims=True)
    s = logits - m_
    lse = jnp.log(jnp.sum(jnp.exp(s), axis=-1, keepdims=True))
    o_ref[...] = s - lse


# ---------------- pallas_call wrappers ----------------

def _gcn_conv(a_p, h_in, w_p, b_p):
    """relu(Â H W + b) with Â streamed per row tile, grid parallel over tiles."""
    np_, kp = h_in.shape
    t = _row_tile(np_)
    grid = (np_ // t,)
    project = w_p is not None
    fp = w_p.shape[1] if project else kp

    a_spec = _a_block_spec((t, np_), lambda i: (i, 0))
    h_spec = pl.BlockSpec((np_, kp), lambda i: (0, 0))          # resident
    b_spec = pl.BlockSpec((1, fp), lambda i: (0, 0))            # resident
    o_spec = pl.BlockSpec((t, fp), lambda i: (i, 0))

    if project:
        kernel = gcn_conv_kernel
        in_specs = [a_spec, h_spec, pl.BlockSpec((kp, fp), lambda i: (0, 0)), b_spec]
        args = (a_p, h_in, w_p, b_p)
        flops = 2 * (np_ * np_ * kp + np_ * kp * fp)
    else:
        kernel = gcn_agg_kernel
        in_specs = [a_spec, h_spec, b_spec]
        args = (a_p, h_in, b_p)
        flops = 2 * np_ * np_ * kp

    need = (_A_BUFFERS * t * np_ * 2 + 2 * np_ * kp * 2 + 2 * kp * fp * 2
            + 2 * fp * 4 + 2 * t * fp * 2)
    bytes_accessed = (np_ * np_ * 2 + np_ * kp * 2
                      + (kp * fp * 2 if project else 0) + fp * 4 + np_ * fp * 2)

    return pl.pallas_call(
        kernel,
        out_shape=jax.ShapeDtypeStruct((np_, fp), jnp.bfloat16),
        grid_spec=pltpu.PrefetchScalarGridSpec(
            num_scalar_prefetch=0, grid=grid,
            in_specs=in_specs, out_specs=o_spec),
        compiler_params=pltpu.CompilerParams(
            dimension_semantics=("parallel",),
            vmem_limit_bytes=_vmem_limit(need)),
        cost_estimate=pl.CostEstimate(flops=int(flops), transcendentals=0,
                                      bytes_accessed=int(bytes_accessed)),
    )(*args)


def _link_head(h2, i0p, i1p, w3a, w3b, b3, out_dim):
    np_, fp = h2.shape
    mp = i0p.shape[0]
    op = w3a.shape[1]
    need = np_ * fp * 2 + 2 * mp * np_ * 2 + 2 * fp * op * 2 + op * 4 + mp * op * 4
    flops = 2 * (2 * mp * np_ * fp + 2 * mp * fp * op)
    return pl.pallas_call(
        functools.partial(link_head_kernel, out_dim=out_dim),
        out_shape=jax.ShapeDtypeStruct((mp, op), jnp.float32),
        in_specs=[_VMEM_SPEC] * 6,
        out_specs=_VMEM_SPEC,
        compiler_params=pltpu.CompilerParams(vmem_limit_bytes=_vmem_limit(need)),
        cost_estimate=pl.CostEstimate(flops=int(flops), transcendentals=int(mp * op),
                                      bytes_accessed=int(need)),
    )(h2, i0p, i1p, w3a, w3b, b3)


# ---------------- parameter preparation (runs ONCE, outside jit) ----------------

def prepare_params(params):
    (w1, b1), (w2, b2), (w3, b3) = params
    d, f = w1.shape
    out_dim = w3.shape[1]
    dp, fp, op = _round_up(d, _LANE), _round_up(f, _LANE), _round_up(out_dim, _LANE)
    pp = dict(
        w1=jnp.zeros((dp, fp), jnp.bfloat16).at[:d, :f].set(w1.astype(jnp.bfloat16)),
        b1=jnp.zeros((1, fp), jnp.float32).at[:, :f].set(b1.reshape(1, f)),
        w2=jnp.zeros((fp, fp), jnp.bfloat16).at[:f, :f].set(w2.astype(jnp.bfloat16)),
        b2=jnp.zeros((1, fp), jnp.float32).at[:, :f].set(b2.reshape(1, f)),
        # split the (2F, out) head weight into its two F-row halves (no concat)
        w3a=jnp.zeros((fp, op), jnp.bfloat16).at[:f, :out_dim].set(w3[:f].astype(jnp.bfloat16)),
        w3b=jnp.zeros((fp, op), jnp.bfloat16).at[:f, :out_dim].set(w3[f:].astype(jnp.bfloat16)),
        b3=jnp.zeros((1, op), jnp.float32).at[:, :out_dim].set(b3.reshape(1, out_dim)),
    )
    return pp, out_dim


# ---------------- forward ----------------

@functools.partial(jax.jit, static_argnames=("out_dim",))
def gcn_link_forward(x, edge_index, index, pp, *, out_dim):
    n, d = x.shape
    m = index.shape[0]
    dp, fp = pp["w1"].shape
    np_ = _round_up(n, _LANE)
    mp = _round_up(m, 16)                 # >= 16 rows: full bf16 sublane pack

    # ---- GCN normalized adjacency, built MXU-style (no dense scatter-add) ----
    # Ã[dst, src] = #edges(src->dst);  Â = D^-1/2 (Ã + I) D^-1/2
    node_ids = jnp.arange(np_, dtype=jnp.int32)[None, :]
    src_oh = (edge_index[0].astype(jnp.int32)[:, None] == node_ids).astype(jnp.bfloat16)
    dst_oh = (edge_index[1].astype(jnp.int32)[:, None] == node_ids).astype(jnp.bfloat16)
    counts = lax.dot_general(dst_oh, src_oh, (((0,), (0,)), ((), ())),
                             preferred_element_type=jnp.float32)     # (Np, Np)
    a_tilde = counts + jnp.eye(np_, dtype=jnp.float32)   # padded diag entries are inert
    deg = jnp.sum(a_tilde, axis=1)
    dinv = jnp.where(deg > 0.0, lax.rsqrt(deg), 0.0)
    a_p = ((dinv[:, None] * a_tilde) * dinv[None, :]).astype(jnp.bfloat16)

    x_p = jnp.zeros((np_, dp), jnp.bfloat16).at[:n, :d].set(x.astype(jnp.bfloat16))

    # ---- conv1: matmul order picked from padded dims ----
    if fp < dp:
        # project-first: Â @ (X W1)  -- smaller K on the N^2 aggregation matmul
        h_in = jnp.dot(x_p, pp["w1"],
                       preferred_element_type=jnp.float32).astype(jnp.bfloat16)
        h1 = _gcn_conv(a_p, h_in, None, pp["b1"])
    else:
        # aggregate-first: (Â @ X) W1
        h1 = _gcn_conv(a_p, x_p, pp["w1"], pp["b1"])

    # ---- conv2 ----
    h2 = _gcn_conv(a_p, h1, pp["w2"], pp["b2"])

    # ---- pair gather + linear head + log_softmax (index passed as int32) ----
    i0p = jnp.full((mp, 1), -1, jnp.int32).at[:m, 0].set(index[:, 0].astype(jnp.int32))
    i1p = jnp.full((mp, 1), -1, jnp.int32).at[:m, 0].set(index[:, 1].astype(jnp.int32))
    out_p = _link_head(h2, i0p, i1p, pp["w3a"], pp["w3b"], pp["b3"], out_dim)

    return out_p[:m, :out_dim]


# ---------------- deterministic parameter init ----------------

def init_linear(key, fan_in, fan_out):
    kw, kb = jax.random.split(key)
    lim = 1.0 / jnp.sqrt(jnp.float32(fan_in))
    w = jax.random.uniform(kw, (fan_in, fan_out), jnp.float32, -lim, lim)
    b = jax.random.uniform(kb, (fan_out,), jnp.float32, -lim, lim)
    return w, b


if __name__ == "__main__":
    key = jax.random.PRNGKey(0)
    ks = jax.random.split(key, 6)

    # small shapes consistent with the module
    N, input_dim, filter_num, out_dim = 32, 16, 32, 4
    E, M = 64, 8   # num graph edges, num query pairs

    x = jax.random.normal(ks[0], (N, input_dim), jnp.float32)
    edge_index = jax.random.randint(ks[1], (2, E), 0, N)   # [src; dst]
    index = jax.random.randint(ks[2], (M, 2), 0, N)        # query node pairs

    params = (
        init_linear(ks[3], input_dim, filter_num),         # conv1 weight/bias
        init_linear(ks[4], filter_num, filter_num),        # conv2 weight/bias
        init_linear(ks[5], 2 * filter_num, out_dim),       # final linear
    )

    pp, od = prepare_params(params)                        # pad/cast weights ONCE
    out = gcn_link_forward(x, edge_index, index, pp, out_dim=od)
    jax.block_until_ready(out)
    assert out.shape == (M, out_dim)
    print("KERNEL_OK")
</pallas_src>

<mosaic_0001>
module attributes {stable_mosaic.version = 11 : i64} {
  func.func @gcn_conv_kernel(%arg0: i32, %arg1: memref<128x128xbf16, #tpu.memory_space<vmem>>, %arg2: memref<128x128xbf16, #tpu.memory_space<vmem>>, %arg3: memref<128x128xbf16, #tpu.memory_space<vmem>>, %arg4: memref<1x128xf32, #tpu.memory_space<vmem>>, %arg5: memref<128x128xbf16, #tpu.memory_space<vmem>>) attributes {dimension_semantics = [#tpu.dimension_semantics<parallel>], iteration_bounds = array<i64: 1>, scalar_prefetch = 0 : i64, scratch_operands = 0 : i64, tpu.core_type = #tpu.core_type<tc>, window_params = [{transform_indices = @transform_0, window_bounds = array<i64: 128, 128>}, {pipeline_mode = #tpu.pipeline_mode<synchronous>, transform_indices = @transform_1, window_bounds = array<i64: 128, 128>}, {pipeline_mode = #tpu.pipeline_mode<synchronous>, transform_indices = @transform_2, window_bounds = array<i64: 128, 128>}, {pipeline_mode = #tpu.pipeline_mode<synchronous>, transform_indices = @transform_3, window_bounds = array<i64: 1, 128>}, {transform_indices = @transform_4, window_bounds = array<i64: 128, 128>}]} {
    %c0 = arith.constant 0 : index
    %c0_0 = arith.constant 0 : index
    %0 = vector.load %arg1[%c0, %c0_0] : memref<128x128xbf16, #tpu.memory_space<vmem>>, vector<128x128xbf16>
    %c0_1 = arith.constant 0 : index
    %c0_2 = arith.constant 0 : index
    %1 = vector.load %arg2[%c0_1, %c0_2] : memref<128x128xbf16, #tpu.memory_space<vmem>>, vector<128x128xbf16>
    %cst = arith.constant dense<0.000000e+00> : vector<128x128xf32>
    %2 = tpu.matmul %0, %1, %cst {dimension_numbers = #tpu.dot_dimension_numbers<[1], [0], [0], [1], [0, 0, 1, 1], [], []>} : vector<128x128xbf16>, vector<128x128xbf16>, vector<128x128xf32> -> vector<128x128xf32>
    %3 = arith.truncf %2 : vector<128x128xf32> to vector<128x128xbf16>
    %c0_3 = arith.constant 0 : index
    %c0_4 = arith.constant 0 : index
    %4 = vector.load %arg3[%c0_3, %c0_4] : memref<128x128xbf16, #tpu.memory_space<vmem>>, vector<128x128xbf16>
    %cst_5 = arith.constant dense<0.000000e+00> : vector<128x128xf32>
    %5 = tpu.matmul %3, %4, %cst_5 {dimension_numbers = #tpu.dot_dimension_numbers<[1], [0], [0], [1], [0, 0, 1, 1], [], []>} : vector<128x128xbf16>, vector<128x128xbf16>, vector<128x128xf32> -> vector<128x128xf32>
    %c0_6 = arith.constant 0 : index
    %c0_7 = arith.constant 0 : index
    %6 = vector.load %arg4[%c0_6, %c0_7] : memref<1x128xf32, #tpu.memory_space<vmem>>, vector<1x128xf32>
    %7 = vector.broadcast %6 : vector<1x128xf32> to vector<128x128xf32>
    %8 = arith.addf %5, %7 : vector<128x128xf32>
    %cst_8 = arith.constant 0.000000e+00 : f32
    %9 = vector.broadcast %cst_8 : f32 to vector<128x128xf32>
    %10 = arith.maximumf %8, %9 : vector<128x128xf32>
    %11 = arith.truncf %10 : vector<128x128xf32> to vector<128x128xbf16>
    %c0_9 = arith.constant 0 : index
    %c0_10 = arith.constant 0 : index
    %12 = vector.load %arg5[%c0_9, %c0_10] : memref<128x128xbf16, #tpu.memory_space<vmem>>, vector<128x128xbf16>
    tpu.vector_store %arg5[%c0_9, %c0_10], %11 {strides = array<i32>} : memref<128x128xbf16, #tpu.memory_space<vmem>>, vector<128x128xbf16>,
    return
  }
  func.func @transform_0(%arg0: i32) -> (i32, i32) {
    %c0_i32 = arith.constant 0 : i32
    %c0_i32_0 = arith.constant 0 : i32
    return %arg0, %c0_i32 : i32, i32
  }
  func.func @transform_1(%arg0: i32) -> (i32, i32) {
    %c0_i32 = arith.constant 0 : i32
    %c0_i32_0 = arith.constant 0 : i32
    %c0_i32_1 = arith.constant 0 : i32
    return %c0_i32, %c0_i32_0 : i32, i32
  }
  func.func @transform_2(%arg0: i32) -> (i32, i32) {
    %c0_i32 = arith.constant 0 : i32
    %c0_i32_0 = arith.constant 0 : i32
    %c0_i32_1 = arith.constant 0 : i32
    return %c0_i32, %c0_i32_0 : i32, i32
  }
  func.func @transform_3(%arg0: i32) -> (i32, i32) {
    %c0_i32 = arith.constant 0 : i32
    %c0_i32_0 = arith.constant 0 : i32
    %c0_i32_1 = arith.constant 0 : i32
    return %c0_i32, %c0_i32_0 : i32, i32
  }
  func.func @transform_4(%arg0: i32) -> (i32, i32) {
    %c0_i32 = arith.constant 0 : i32
    %c0_i32_0 = arith.constant 0 : i32
    return %arg0, %c0_i32 : i32, i32
  }
}

module attributes {stable_mosaic.version = 11 : i64} {
  func.func @link_head_kernel(%arg0: memref<128x128xbf16, #tpu.memory_space<vmem>>, %arg1: memref<16x1xi32, #tpu.memory_space<vmem>>, %arg2: memref<16x1xi32, #tpu.memory_space<vmem>>, %arg3: memref<128x128xbf16, #tpu.memory_space<vmem>>, %arg4: memref<128x128xbf16, #tpu.memory_space<vmem>>, %arg5: memref<1x128xf32, #tpu.memory_space<vmem>>, %arg6: memref<16x128xf32, #tpu.memory_space<vmem>>) attributes {dimension_semantics = [], scalar_prefetch = 0 : i64, scratch_operands = 0 : i64, tpu.core_type = #tpu.core_type<tc>} {
    %c0 = arith.constant 0 : index
    %c0_0 = arith.constant 0 : index
    %0 = vector.load %arg0[%c0, %c0_0] : memref<128x128xbf16, #tpu.memory_space<vmem>>, vector<128x128xbf16>
    %1 = tpu.iota {dimensions = array<i32: 1>} : vector<16x128xi32>
    %c0_1 = arith.constant 0 : index
    %c0_2 = arith.constant 0 : index
    %2 = vector.load %arg1[%c0_1, %c0_2] : memref<16x1xi32, #tpu.memory_space<vmem>>, vector<16x1xi32>
    %3 = vector.broadcast %2 : vector<16x1xi32> to vector<16x128xi32>
    %4 = arith.cmpi eq, %1, %3 : vector<16x128xi32>
    %5 = arith.extui %4 : vector<16x128xi1> to vector<16x128xi32>
    %6 = arith.sitofp %5 : vector<16x128xi32> to vector<16x128xf32>
    %7 = arith.truncf %6 : vector<16x128xf32> to vector<16x128xbf16>
    %c0_3 = arith.constant 0 : index
    %c0_4 = arith.constant 0 : index
    %8 = vector.load %arg2[%c0_3, %c0_4] : memref<16x1xi32, #tpu.memory_space<vmem>>, vector<16x1xi32>
    %9 = vector.broadcast %8 : vector<16x1xi32> to vector<16x128xi32>
    %10 = arith.cmpi eq, %1, %9 : vector<16x128xi32>
    %11 = arith.extui %10 : vector<16x128xi1> to vector<16x128xi32>
    %12 = arith.sitofp %11 : vector<16x128xi32> to vector<16x128xf32>
    %13 = arith.truncf %12 : vector<16x128xf32> to vector<16x128xbf16>
    %cst = arith.constant dense<0.000000e+00> : vector<16x128xf32>
    %14 = tpu.matmul %7, %0, %cst {dimension_numbers = #tpu.dot_dimension_numbers<[1], [0], [0], [1], [0, 0, 1, 1], [], []>} : vector<16x128xbf16>, vector<128x128xbf16>, vector<16x128xf32> -> vector<16x128xf32>
    %cst_5 = arith.constant dense<0.000000e+00> : vector<16x128xf32>
    %15 = tpu.matmul %13, %0, %cst_5 {dimension_numbers = #tpu.dot_dimension_numbers<[1], [0], [0], [1], [0, 0, 1, 1], [], []>} : vector<16x128xbf16>, vector<128x128xbf16>, vector<16x128xf32> -> vector<16x128xf32>
    %16 = arith.truncf %14 : vector<16x128xf32> to vector<16x128xbf16>
    %c0_6 = arith.constant 0 : index
    %c0_7 = arith.constant 0 : index
    %17 = vector.load %arg3[%c0_6, %c0_7] : memref<128x128xbf16, #tpu.memory_space<vmem>>, vector<128x128xbf16>
    %cst_8 = arith.constant dense<0.000000e+00> : vector<16x128xf32>
    %18 = tpu.matmul %16, %17, %cst_8 {dimension_numbers = #tpu.dot_dimension_numbers<[1], [0], [0], [1], [0, 0, 1, 1], [], []>} : vector<16x128xbf16>, vector<128x128xbf16>, vector<16x128xf32> -> vector<16x128xf32>
    %19 = arith.truncf %15 : vector<16x128xf32> to vector<16x128xbf16>
    %c0_9 = arith.constant 0 : index
    %c0_10 = arith.constant 0 : index
    %20 = vector.load %arg4[%c0_9, %c0_10] : memref<128x128xbf16, #tpu.memory_space<vmem>>, vector<128x128xbf16>
    %cst_11 = arith.constant dense<0.000000e+00> : vector<16x128xf32>
    %21 = tpu.matmul %19, %20, %cst_11 {dimension_numbers = #tpu.dot_dimension_numbers<[1], [0], [0], [1], [0, 0, 1, 1], [], []>} : vector<16x128xbf16>, vector<128x128xbf16>, vector<16x128xf32> -> vector<16x128xf32>
    %22 = arith.addf %18, %21 : vector<16x128xf32>
    %c0_12 = arith.constant 0 : index
    %c0_13 = arith.constant 0 : index
    %23 = vector.load %arg5[%c0_12, %c0_13] : memref<1x128xf32, #tpu.memory_space<vmem>>, vector<1x128xf32>
    %24 = vector.broadcast %23 : vector<1x128xf32> to vector<16x128xf32>
    %25 = arith.addf %22, %24 : vector<16x128xf32>
    %26 = tpu.iota {dimensions = array<i32: 1>} : vector<16x128xi32>
    %c4_i32 = arith.constant 4 : i32
    %27 = vector.broadcast %c4_i32 : i32 to vector<16x128xi32>
    %28 = arith.cmpi slt, %26, %27 : vector<16x128xi32>
    %cst_14 = arith.constant -1.000000e+30 : f32
    %29 = vector.broadcast %cst_14 : f32 to vector<16x128xf32>
    %30 = arith.select %28, %25, %29 : vector<16x128xi1>, vector<16x128xf32>
    %cst_15 = arith.constant dense<0xFF800000> : vector<16xf32>
    %31 = vector.multi_reduction <maximumf>, %30, %cst_15 [1] : vector<16x128xf32> to vector<16xf32>
    %32 = vector.shape_cast %31 : vector<16xf32> to vector<16x1xf32>
    %33 = vector.broadcast %32 : vector<16x1xf32> to vector<16x128xf32>
    %34 = arith.subf %30, %33 : vector<16x128xf32>
    %35 = math.exp %34 : vector<16x128xf32>
    %cst_16 = arith.constant dense<0.000000e+00> : vector<16xf32>
    %36 = vector.multi_reduction <add>, %35, %cst_16 [1] : vector<16x128xf32> to vector<16xf32>
    %37 = vector.shape_cast %36 : vector<16xf32> to vector<16x1xf32>
    %38 = math.log %37 : vector<16x1xf32>
    %39 = vector.broadcast %38 : vector<16x1xf32> to vector<16x128xf32>
    %40 = arith.subf %34, %39 : vector<16x128xf32>
    %c0_17 = arith.constant 0 : index
    %c0_18 = arith.constant 0 : index
    %41 = vector.load %arg6[%c0_17, %c0_18] : memref<16x128xf32, #tpu.memory_space<vmem>>, vector<16x128xf32>
    tpu.vector_store %arg6[%c0_17, %c0_18], %40 {strides = array<i32>} : memref<16x128xf32, #tpu.memory_space<vmem>>, vector<16x128xf32>,
    return
  }
}

</mosaic_0001>

<bundles_post_ra>
// kernel: gcn_link_forward.5
= control target key start
LH: loop header
LB: loop body
LE: loop exit
PB: predicated region body
PF: predicated region fallthrough
CT: control target
= control target key end

     0   :  { %v639_v0 = vmov 0   ;;  %v640_v5 = vmov 0.0   ;;  %vm641_vm0 = vmmov 0   ;;  %v40_v14 = vlaneseq  ;;  %s818_s2 = inlined_call_operand.vmem [shape: s32[16,1], index: 2, kind: input, shape index: {}]   ;;  %s819_s1 = inlined_call_operand.vmem [shape: s32[16,1], index: 1, kind: input, shape index: {}]   ;;  %s820_s0 = inlined_call_operand.vmem [shape: bf16[128,128], index: 0, kind: input, shape index: {}]   ;;  %s821_s4 = inlined_call_operand.vmem [shape: bf16[128,128], index: 4, kind: input, shape index: {}]   ;;  %s822_s3 = inlined_call_operand.vmem [shape: bf16[128,128], index: 3, kind: input, shape index: {}]   ;;  %s823_s5 = inlined_call_operand.vmem [shape: f32[1,128], index: 5, kind: input, shape index: {}]   ;;  %s824_s6 = inlined_call_operand.vmem [shape: f32[16,128], index: 6, kind: output, shape index: {}]  }
   0x1   :  { %606 = vset.pattern.permute.xlu1 %v639_v0  ;;  %605 = vset.pattern.permute.xlu0 %v639_v0  ;;  %v57_v1 = vld [vmem:[%s818_s2] sm:$0xff]  ;;  %v58_v3 = vld [vmem:[%s818_s2 + $0x8] sm:$0xff]  ;;  %v607_v6 = vld [vmem:[%s820_s0 + $0x38] sm:$0xff]   ;;  %v642_v22 = vmov 1.0|1.0  }
   0x2   :  { %v42_v2 = vld [vmem:[%s819_s1] sm:$0xff]  ;;  %60 = vperm.xlu1 %606, %v57_v1   ;;  %v43_v4 = vld [vmem:[%s819_s1 + $0x8] sm:$0xff]  ;;  %521 = vmatprep.subr.bf16.mxu0 %v640_v5  ;;  %v608_v7 = vld [vmem:[%s820_s0 + $0x30] sm:$0xff]   ;;  %v736_v17 = vand.u32 127, %v40_v14 }
   0x3   :  { %45 = vperm.xlu0 %605, %v42_v2   ;;  %541 = vmatprep.subr.bf16.mxu1 %v640_v5  ;;  %v609_v8 = vld [vmem:[%s820_s0 + $0x28] sm:$0xff]   ;;  %v610_v9 = vld [vmem:[%s820_s0 + $0x20] sm:$0xff]   ;;  %v611_v10 = vld [vmem:[%s820_s0 + $0x18] sm:$0xff]  }
   0x4   :  { %537 = vmatprep.mubr.msk.bf16.mxu0 %vm641_vm0, %v640_v5  ;;  %557 = vmatprep.mubr.msk.bf16.mxu1 %vm641_vm0, %v640_v5  ;;  %v612_v11 = vld [vmem:[%s820_s0 + $0x10] sm:$0xff]   ;;  %v613_v12 = vld [vmem:[%s820_s0 + $0x8] sm:$0xff]   ;;  %v614_v13 = vld [vmem:[%s820_s0] sm:$0xff]   ;;  %vm423_vm7 = vcmp.lt.s32.totalorder %v736_v17, 4 }
   0x5   :  { %522 = vmatpush3.bf16.msra.mxu0 %v607_v6  ;;  %542 = vmatpush3.bf16.msra.mxu1 %v607_v6  ;;  %v616_v20 = vld [vmem:[%s822_s3 + $0x38] sm:$0xff]   ;;  %v618_v23 = vld [vmem:[%s822_s3 + $0x30] sm:$0xff]   ;;  %v620_v25 = vld [vmem:[%s822_s3 + $0x28] sm:$0xff]  }
   0x6   :  { %63 = vperm.xlu1 %606, %v58_v3   ;;  %523 = vmatprep.subr.bf16.mxu0 %v640_v5  ;;  %v615_v21 = vld [vmem:[%s821_s4 + $0x38] sm:$0xff]   ;;  %v617_v24 = vld [vmem:[%s821_s4 + $0x30] sm:$0xff]   ;;  %v619_v26 = vld [vmem:[%s821_s4 + $0x28] sm:$0xff]  }
   0x7   :  { %48 = vperm.xlu0 %605, %v43_v4   ;;  %543 = vmatprep.subr.bf16.mxu1 %v640_v5  ;;  %v622_v27 = vld [vmem:[%s822_s3 + $0x20] sm:$0xff]   ;;  %v624_v29 = vld [vmem:[%s822_s3 + $0x18] sm:$0xff]   ;;  %v626_v31 = vld [vmem:[%s822_s3 + $0x10] sm:$0xff]  }
   0x8   :  { %v621_v28 = vld [vmem:[%s821_s4 + $0x20] sm:$0xff]   ;;  %v623_v30 = vld [vmem:[%s821_s4 + $0x18] sm:$0xff]   ;;  %v625_v32 = vld [vmem:[%s821_s4 + $0x10] sm:$0xff]  }
   0x9   :  { %524 = vmatpush3.bf16.msra.mxu0 %v608_v7  ;;  %544 = vmatpush3.bf16.msra.mxu1 %v608_v7  ;;  %v627_v33 = vld [vmem:[%s821_s4 + $0x8] sm:$0xff]   ;;  %v629_v35 = vld [vmem:[%s821_s4] sm:$0xff]  }
   0xa   :  { %525 = vmatprep.subr.bf16.mxu0 %v640_v5  ;;  %545 = vmatprep.subr.bf16.mxu1 %v640_v5  ;;  %v628_v34 = vld [vmem:[%s822_s3 + $0x8] sm:$0xff]   ;;  %v630_v36 = vld [vmem:[%s822_s3] sm:$0xff]  }
   0xb   :  { %v484_v49 = vld [vmem:[%s823_s5] ss:$0 sm:$0xff] }
   0xd   :  { %526 = vmatpush3.bf16.msra.mxu0 %v609_v8  ;;  %546 = vmatpush3.bf16.msra.mxu1 %v609_v8 }
   0xe   :  { %527 = vmatprep.subr.bf16.mxu0 %v640_v5  ;;  %547 = vmatprep.subr.bf16.mxu1 %v640_v5 }
  0x11   :  { %528 = vmatpush3.bf16.msra.mxu0 %v610_v9  ;;  %548 = vmatpush3.bf16.msra.mxu1 %v610_v9 }
  0x12   :  { %529 = vmatprep.subr.bf16.mxu0 %v640_v5  ;;  %549 = vmatprep.subr.bf16.mxu1 %v640_v5 }
  0x15   :  { %530 = vmatpush3.bf16.msra.mxu0 %v611_v10  ;;  %550 = vmatpush3.bf16.msra.mxu1 %v611_v10 }
  0x16   :  { %531 = vmatprep.subr.bf16.mxu0 %v640_v5  ;;  %551 = vmatprep.subr.bf16.mxu1 %v640_v5 }
  0x19   :  { %532 = vmatpush3.bf16.msra.mxu0 %v612_v11  ;;  %552 = vmatpush3.bf16.msra.mxu1 %v612_v11 }
  0x1a   :  { %533 = vmatprep.subr.bf16.mxu0 %v640_v5  ;;  %553 = vmatprep.subr.bf16.mxu1 %v640_v5 }
  0x1d   :  { %534 = vmatpush3.bf16.msra.mxu0 %v613_v12  ;;  %554 = vmatpush3.bf16.msra.mxu1 %v613_v12 }
  0x1e   :  { %535 = vmatprep.subr.bf16.mxu0 %v640_v5  ;;  %555 = vmatprep.subr.bf16.mxu1 %v640_v5 }
  0x21   :  { %536 = vmatpush3.bf16.msra.mxu0 %v614_v13  ;;  %556 = vmatpush3.bf16.msra.mxu1 %v614_v13 }
  0x22   :  { %561 = vmatprep.subr.bf16.mxu0 %v640_v5  ;;  %581 = vmatprep.subr.bf16.mxu1 %v640_v5 }
  0x7d   :  { %v61_v15 = vpop.permute.xlu1 %60 }
  0x7e   :  { %v46_v16 = vpop.permute.xlu0 %45  ;;  %vm65_vm1 = vcmp.eq.s32.totalorder %v736_v17, %v61_v15 }
  0x7f   :  { %vm50_vm4 = vcmp.eq.s32.totalorder %v736_v17, %v46_v16 }
  0x81   :  { %v64_v18 = vpop.permute.xlu1 %63 }
  0x82   :  { %v49_v19 = vpop.permute.xlu0 %48  ;;  %vm66_vm2 = vcmp.eq.s32.totalorder %v736_v17, %v64_v18 }
  0x83   :  { %vm51_vm3 = vcmp.eq.s32.totalorder %v736_v17, %v49_v19  ;;  %vm466_vm5 = vmpackc.low %vm66_vm2, %vm65_vm1 }
  0x84   :  { %vm464_vm6 = vmpackc.low %vm51_vm3, %vm50_vm4  ;;  %558 = vmatmul.mubr.msk.bf16.vlgmr.msra.gmra.mxu1 %vm466_vm5, %v642_v22 }
  0x85   :  { %538 = vmatmul.mubr.msk.bf16.vlgmr.msra.gmra.mxu0 %vm464_vm6, %v642_v22  ;;  %582 = vmatpush3.bf16.msra.mxu1 %v616_v20 }
  0x86   :  { %562 = vmatpush3.bf16.msra.mxu0 %v615_v21  ;;  %583 = vmatprep.subr.bf16.mxu1 %v640_v5 }
  0x87   :  { %563 = vmatprep.subr.bf16.mxu0 %v640_v5  ;;  %577 = vmatprep.mubr.msk.bf16.mxu0 %vm641_vm0, %v640_v5 }
  0x88   :  { %597 = vmatprep.mubr.msk.bf16.mxu1 %vm641_vm0, %v640_v5 }
  0x89   :  { %584 = vmatpush3.bf16.msra.mxu1 %v618_v23 }
  0x8a   :  { %564 = vmatpush3.bf16.msra.mxu0 %v617_v24  ;;  %585 = vmatprep.subr.bf16.mxu1 %v640_v5 }
  0x8b   :  { %565 = vmatprep.subr.bf16.mxu0 %v640_v5 }
  0x8d   :  { %586 = vmatpush3.bf16.msra.mxu1 %v620_v25 }
  0x8e   :  { %566 = vmatpush3.bf16.msra.mxu0 %v619_v26  ;;  %587 = vmatprep.subr.bf16.mxu1 %v640_v5 }
  0x8f   :  { %567 = vmatprep.subr.bf16.mxu0 %v640_v5 }
  0x91   :  { %588 = vmatpush3.bf16.msra.mxu1 %v622_v27 }
  0x92   :  { %568 = vmatpush3.bf16.msra.mxu0 %v621_v28  ;;  %589 = vmatprep.subr.bf16.mxu1 %v640_v5 }
  0x93   :  { %569 = vmatprep.subr.bf16.mxu0 %v640_v5 }
  0x95   :  { %590 = vmatpush3.bf16.msra.mxu1 %v624_v29 }
  0x96   :  { %570 = vmatpush3.bf16.msra.mxu0 %v623_v30  ;;  %591 = vmatprep.subr.bf16.mxu1 %v640_v5 }
  0x97   :  { %571 = vmatprep.subr.bf16.mxu0 %v640_v5 }
  0x99   :  { %592 = vmatpush3.bf16.msra.mxu1 %v626_v31 }
  0x9a   :  { %572 = vmatpush3.bf16.msra.mxu0 %v625_v32  ;;  %593 = vmatprep.subr.bf16.mxu1 %v640_v5 }
  0x9b   :  { %573 = vmatprep.subr.bf16.mxu0 %v640_v5 }
  0x9d   :  { %594 = vmatpush3.bf16.msra.mxu1 %v628_v34 }
  0x9e   :  { %574 = vmatpush3.bf16.msra.mxu0 %v627_v33  ;;  %595 = vmatprep.subr.bf16.mxu1 %v640_v5 }
  0x9f   :  { %575 = vmatprep.subr.bf16.mxu0 %v640_v5 }
  0xa1   :  { %596 = vmatpush3.bf16.msra.mxu1 %v630_v36 }
  0xa2   :  { %576 = vmatpush3.bf16.msra.mxu0 %v629_v35 }
 0x144   :  { %v195_v37 = vpop.f32.mrf.mxu1 }
 0x145   :  { %v154_v38 = vpop.f32.mrf.mxu0 }
 0x146   :  { %v559_v39 = vpop.f32.mrf.mxu1 }
 0x147   :  { %v539_v40 = vpop.f32.mrf.mxu0 }
 0x148   :  { %v198_v41 = vpop.f32.mrf.mxu1 }
 0x149   :  { %v157_v42 = vpop.f32.mrf.mxu0  ;;  %v219_v43 = vpack.c.bf16 %v198_v41, %v195_v37 }
 0x14a   :  { %v202_v44 = vpack.c.bf16 %v157_v42, %v154_v38  ;;  %v560_v45 = vpop.f32.mrf.mxu1 }
 0x14b   :  { %v540_v46 = vpop.f32.mrf.mxu0  ;;  %578 = vmatmul.mubr.bf16.vlgmr.msra.gmra.mxu0 %v219_v43 }
 0x14c   :  { %598 = vmatmul.mubr.bf16.vlgmr.msra.gmra.mxu1 %v202_v44 }
 0x20b   :  { %v318_v47 = vpop.f32.mrf.mxu0 }
 0x20c   :  { %v407_v48 = vpop.f32.mrf.mxu1 }
 0x20d   :  { %v408_v50 = vadd.f32 %v407_v48, %v318_v47  ;;  %v579_v51 = vpop.f32.mrf.mxu0 }
 0x20e   :  { %v599_v52 = vpop.f32.mrf.mxu1 }
 0x20f   :  { %v321_v53 = vpop.f32.mrf.mxu0  ;;  %v421_v54 = vadd.f32 %v484_v49, %v408_v50 }
 0x210   :  { %v410_v55 = vpop.f32.mrf.mxu1 }
 0x211   :  { %v411_v56 = vadd.f32 %v410_v55, %v321_v53  ;;  %v424_v57 = vsel %vm423_vm7, %v421_v54, -1e+30  ;;  %v580_v58 = vpop.f32.mrf.mxu0 }
 0x212   :  { %v600_v59 = vpop.f32.mrf.mxu1  ;;  %426 = vmax.xlane.f32.xlu0 %v424_v57 }
 0x213   :  { %v422_v60 = vadd.f32 %v484_v49, %v411_v56 }
 0x215   :  { %v425_v61 = vsel %vm423_vm7, %v422_v60, -1e+30 }
 0x216   :  { %428 = vmax.xlane.f32.xlu1 %v425_v61 }
 0x29b   :  { %v427_v62 = vpop.xlane.xlu0 %426 }
 0x29c   :  { %v430_v63 = vsub.f32 %v424_v57, %v427_v62 }
 0x29e   :  { %v432_v0 = vmul.f32 1.442695, %v430_v63 }
 0x29f   :  { %v429_v1 = vpop.xlane.xlu1 %428 }
 0x2a0   :  { %631 = vpow2.f32 %v432_v0  ;;  %v431_v2 = vsub.f32 %v425_v61, %v429_v1 }
 0x2a2   :  { %v434_v3 = vmul.f32 1.442695, %v431_v2 }
 0x2a4   :  { %633 = vpow2.f32 %v434_v3 }
 0x2ad   :  { %v632_v4 = vpop.eup %631 }
 0x2ae   :  { %436 = vadd.xlane.f32.xlu0 %v632_v4 }
 0x2b1   :  { %v634_v5 = vpop.eup %633 }
 0x2b2   :  { %438 = vadd.xlane.f32.xlu0 %v634_v5 }
 0x337   :  { %v437_v6 = vpop.xlane.xlu0 %436 }
 0x338   :  { %635 = vlog2.f32 %v437_v6 }
 0x33b   :  { %v439_v7 = vpop.xlane.xlu0 %438 }
 0x33c   :  { %637 = vlog2.f32 %v439_v7 }
 0x345   :  { %v636_v8 = vpop.eup %635 }
 0x346   :  { %v441_v9 = vmul.f32 0.6931472, %v636_v8 }
 0x348   :  { %v444_v10 = vsub.f32 %v430_v63, %v441_v9 }
 0x349   :  { %v638_v11 = vpop.eup %637 }
 0x34a   :  { %446 = vst [vmem:[%s824_s6] sm:$0xff] %v444_v10  ;;  %v443_v12 = vmul.f32 0.6931472, %v638_v11 }
 0x34c   :  { %v445_v13 = vsub.f32 %v431_v2, %v443_v12 }
 0x34e   :  { %447 = vst [vmem:[%s824_s6 + $0x8] sm:$0xff] %v445_v13 }

// kernel: gcn_link_forward.3
= control target key start
LH: loop header
LB: loop body
LE: loop exit
PB: predicated region body
PF: predicated region fallthrough
CT: control target
= control target key end

     0   :  { %s867_s1 = inlined_call_operand.vmem [shape: bf16[128,128], index: 1, kind: input, shape index: {}]   ;;  %s868_s0 = inlined_call_operand.vmem [shape: bf16[128,128], index: 0, kind: input, shape index: {}]   ;;  %s869_s2 = inlined_call_operand.vmem [shape: bf16[128,128], index: 2, kind: input, shape index: {}]   ;;  %s870_s3 = inlined_call_operand.vmem [shape: f32[1,128], index: 3, kind: input, shape index: {}]   ;;  %s871_s4 = inlined_call_operand.vmem [shape: bf16[128,128], index: 4, kind: output, shape index: {}]  }
   0x1   :  { %v719_v0 = vld [vmem:[%s867_s1 + $0x38] sm:$0xff]   ;;  %v720_v1 = vld [vmem:[%s867_s1 + $0x30] sm:$0xff]   ;;  %v721_v2 = vld [vmem:[%s867_s1 + $0x28] sm:$0xff]  }
   0x2   :  { %655 = vmatprep.subr.bf16.mxu0 %v719_v0  ;;  %v722_v3 = vld [vmem:[%s867_s1 + $0x20] sm:$0xff]   ;;  %v723_v5 = vld [vmem:[%s867_s1 + $0x18] sm:$0xff]   ;;  %v724_v6 = vld [vmem:[%s867_s1 + $0x10] sm:$0xff]  }
   0x3   :  { %656 = vmatpush3.bf16.msra.mxu0 %v719_v0  ;;  %v727_v4 = vld [vmem:[%s868_s0] sm:$0xff]   ;;  %v735_v7 = vld [vmem:[%s869_s2 + $0x38] sm:$0xff]   ;;  %v736_v8 = vld [vmem:[%s869_s2 + $0x30] sm:$0xff]  }
   0x4   :  { %657 = vmatprep.subr.bf16.mxu0 %v720_v1  ;;  %671 = vmatprep.mubr.bf16.mxu0 %v727_v4  ;;  %v725_v9 = vld [vmem:[%s867_s1 + $0x8] sm:$0xff]   ;;  %v726_v11 = vld [vmem:[%s867_s1] sm:$0xff]   ;;  %v739_v13 = vld [vmem:[%s869_s2 + $0x18] sm:$0xff]  }
   0x5   :  { %687 = vmatprep.subr.bf16.mxu1 %v735_v7  ;;  %v737_v10 = vld [vmem:[%s869_s2 + $0x28] sm:$0xff]   ;;  %v738_v12 = vld [vmem:[%s869_s2 + $0x20] sm:$0xff]   ;;  %v729_v15 = vld [vmem:[%s868_s0 + $0x10] sm:$0xff]  }
   0x6   :  { %688 = vmatpush3.bf16.msra.mxu1 %v735_v7  ;;  %v728_v14 = vld [vmem:[%s868_s0 + $0x8] sm:$0xff]   ;;  %v740_v16 = vld [vmem:[%s869_s2 + $0x10] sm:$0xff]   ;;  %v730_v17 = vld [vmem:[%s868_s0 + $0x18] sm:$0xff]  }
   0x7   :  { %658 = vmatpush3.bf16.msra.mxu0 %v720_v1  ;;  %689 = vmatprep.subr.bf16.mxu1 %v736_v8  ;;  %v731_v18 = vld [vmem:[%s868_s0 + $0x20] sm:$0xff]   ;;  %v732_v19 = vld [vmem:[%s868_s0 + $0x28] sm:$0xff]   ;;  %v733_v20 = vld [vmem:[%s868_s0 + $0x30] sm:$0xff]  }
   0x8   :  { %659 = vmatprep.subr.bf16.mxu0 %v721_v2  ;;  %v734_v21 = vld [vmem:[%s868_s0 + $0x38] sm:$0xff]   ;;  %v741_v22 = vld [vmem:[%s869_s2 + $0x8] sm:$0xff]   ;;  %v742_v23 = vld [vmem:[%s869_s2] sm:$0xff]  }
   0x9   :  { %v535_v49 = vld [vmem:[%s870_s3] ss:$0 sm:$0xff] }
   0xa   :  { %690 = vmatpush3.bf16.msra.mxu1 %v736_v8 }
   0xb   :  { %660 = vmatpush3.bf16.msra.mxu0 %v721_v2  ;;  %691 = vmatprep.subr.bf16.mxu1 %v737_v10 }
   0xc   :  { %661 = vmatprep.subr.bf16.mxu0 %v722_v3 }
   0xe   :  { %692 = vmatpush3.bf16.msra.mxu1 %v737_v10 }
   0xf   :  { %662 = vmatpush3.bf16.msra.mxu0 %v722_v3  ;;  %693 = vmatprep.subr.bf16.mxu1 %v738_v12 }
  0x10   :  { %663 = vmatprep.subr.bf16.mxu0 %v723_v5 }
  0x12   :  { %694 = vmatpush3.bf16.msra.mxu1 %v738_v12 }
  0x13   :  { %664 = vmatpush3.bf16.msra.mxu0 %v723_v5  ;;  %695 = vmatprep.subr.bf16.mxu1 %v739_v13 }
  0x14   :  { %665 = vmatprep.subr.bf16.mxu0 %v724_v6 }
  0x16   :  { %696 = vmatpush3.bf16.msra.mxu1 %v739_v13 }
  0x17   :  { %666 = vmatpush3.bf16.msra.mxu0 %v724_v6  ;;  %697 = vmatprep.subr.bf16.mxu1 %v740_v16 }
  0x18   :  { %667 = vmatprep.subr.bf16.mxu0 %v725_v9 }
  0x1a   :  { %698 = vmatpush3.bf16.msra.mxu1 %v740_v16 }
  0x1b   :  { %668 = vmatpush3.bf16.msra.mxu0 %v725_v9  ;;  %699 = vmatprep.subr.bf16.mxu1 %v741_v22 }
  0x1c   :  { %669 = vmatprep.subr.bf16.mxu0 %v726_v11 }
  0x1e   :  { %700 = vmatpush3.bf16.msra.mxu1 %v741_v22 }
  0x1f   :  { %670 = vmatpush3.bf16.msra.mxu0 %v726_v11  ;;  %701 = vmatprep.subr.bf16.mxu1 %v742_v23 }
  0x22   :  { %672 = vmatmul.mubr.bf16.vlgmr.msra.gmra.mxu0 %v728_v14  ;;  %702 = vmatpush3.bf16.msra.mxu1 %v742_v23 }
  0x23   :  { %675 = vmatprep.mubr.bf16.mxu0 %v729_v15 }
  0x2a   :  { %676 = vmatmul.mubr.bf16.gmra.mxu0 %v730_v17 }
  0x2b   :  { %679 = vmatprep.mubr.bf16.mxu0 %v731_v18 }
  0x32   :  { %680 = vmatmul.mubr.bf16.gmra.mxu0 %v732_v19 }
  0x33   :  { %683 = vmatprep.mubr.bf16.mxu0 %v733_v20 }
  0x3a   :  { %684 = vmatmul.mubr.bf16.gmra.mxu0 %v734_v21 }
  0xe2   :  { %v673_v24 = vpop.f32.mrf.mxu0 }
  0xe4   :  { %v180_v25 = vpop.f32.mrf.mxu0 }
  0xe6   :  { %v674_v26 = vpop.f32.mrf.mxu0 }
  0xe7   :  { %v244_v29 = vpack.c.bf16 %v674_v26, %v673_v24 }
  0xe8   :  { %v183_v27 = vpop.f32.mrf.mxu0 }
  0xe9   :  { %v243_v28 = vpack.c.bf16 %v183_v27, %v180_v25 }
  0xea   :  { %v677_v30 = vpop.f32.mrf.mxu0 }
  0xeb   :  { %703 = vmatprep.mubr.bf16.mxu1 %v243_v28 }
  0xec   :  { %v196_v31 = vpop.f32.mrf.mxu0  ;;  %704 = vmatmul.mubr.bf16.vlgmr.msra.gmra.mxu1 %v244_v29 }
  0xee   :  { %v678_v32 = vpop.f32.mrf.mxu0 }
  0xef   :  { %v246_v35 = vpack.c.bf16 %v678_v32, %v677_v30 }
  0xf0   :  { %v199_v33 = vpop.f32.mrf.mxu0 }
  0xf1   :  { %v245_v34 = vpack.c.bf16 %v199_v33, %v196_v31 }
  0xf2   :  { %v681_v36 = vpop.f32.mrf.mxu0 }
  0xf3   :  { %707 = vmatprep.mubr.bf16.mxu1 %v245_v34 }
  0xf4   :  { %v212_v37 = vpop.f32.mrf.mxu0  ;;  %708 = vmatmul.mubr.bf16.gmra.mxu1 %v246_v35 }
  0xf6   :  { %v682_v38 = vpop.f32.mrf.mxu0 }
  0xf7   :  { %v248_v41 = vpack.c.bf16 %v682_v38, %v681_v36 }
  0xf8   :  { %v215_v39 = vpop.f32.mrf.mxu0 }
  0xf9   :  { %v247_v40 = vpack.c.bf16 %v215_v39, %v212_v37 }
  0xfa   :  { %v685_v42 = vpop.f32.mrf.mxu0 }
  0xfb   :  { %711 = vmatprep.mubr.bf16.mxu1 %v247_v40 }
  0xfc   :  { %v228_v43 = vpop.f32.mrf.mxu0  ;;  %712 = vmatmul.mubr.bf16.gmra.mxu1 %v248_v41 }
  0xfe   :  { %v686_v44 = vpop.f32.mrf.mxu0 }
  0xff   :  { %v250_v47 = vpack.c.bf16 %v686_v44, %v685_v42 }
 0x100   :  { %v231_v45 = vpop.f32.mrf.mxu0 }
 0x101   :  { %v249_v46 = vpack.c.bf16 %v231_v45, %v228_v43 }
 0x103   :  { %715 = vmatprep.mubr.bf16.mxu1 %v249_v46 }
 0x104   :  { %716 = vmatmul.mubr.bf16.gmra.mxu1 %v250_v47 }
 0x1ac   :  { %v705_v48 = vpop.f32.mrf.mxu1 }
 0x1ad   :  { %v365_v51 = vadd.f32 %v705_v48, %v535_v49 }
 0x1ae   :  { %v356_v50 = vpop.f32.mrf.mxu1 }
 0x1af   :  { %v357_v53 = vadd.f32 %v535_v49, %v356_v50  ;;  %v421_v56 = vmax.f32 %v365_v51, 0.0 }
 0x1b0   :  { %v706_v52 = vpop.f32.mrf.mxu1 }
 0x1b1   :  { %v368_v54 = vadd.f32 %v706_v52, %v535_v49  ;;  %v419_v60 = vmax.f32 %v357_v53, 0.0 }
 0x1b2   :  { %v359_v55 = vpop.f32.mrf.mxu1 }
 0x1b3   :  { %v422_v57 = vmax.f32 %v368_v54, 0.0  ;;  %v360_v58 = vadd.f32 %v535_v49, %v359_v55 }
 0x1b4   :  { %v709_v59 = vpop.f32.mrf.mxu1 }
 0x1b5   :  { %v584_v61 = vpack.c.bf16 %v422_v57, %v421_v56  ;;  %v420_v62 = vmax.f32 %v360_v58, 0.0  ;;  %v381_v1 = vadd.f32 %v709_v59, %v535_v49 }
 0x1b6   :  { %v372_v63 = vpop.f32.mrf.mxu1 }
 0x1b7   :  { %616 = vst [vmem:[%s871_s4 + $0x8] sm:$0xff] %v584_v61   ;;  %v579_v0 = vpack.c.bf16 %v420_v62, %v419_v60  ;;  %v373_v3 = vadd.f32 %v535_v49, %v372_v63  ;;  %v425_v6 = vmax.f32 %v381_v1, 0.0 }
 0x1b8   :  { %v710_v2 = vpop.f32.mrf.mxu1 }
 0x1b9   :  { %580 = vst [vmem:[%s871_s4] sm:$0xff] %v579_v0   ;;  %v384_v4 = vadd.f32 %v710_v2, %v535_v49  ;;  %v423_v10 = vmax.f32 %v373_v3, 0.0 }
 0x1ba   :  { %v375_v5 = vpop.f32.mrf.mxu1 }
 0x1bb   :  { %v426_v7 = vmax.f32 %v384_v4, 0.0  ;;  %v376_v8 = vadd.f32 %v535_v49, %v375_v5 }
 0x1bc   :  { %v713_v9 = vpop.f32.mrf.mxu1 }
 0x1bd   :  { %v594_v11 = vpack.c.bf16 %v426_v7, %v425_v6  ;;  %v424_v12 = vmax.f32 %v376_v8, 0.0  ;;  %v397_v15 = vadd.f32 %v713_v9, %v535_v49 }
 0x1be   :  { %v388_v13 = vpop.f32.mrf.mxu1 }
 0x1bf   :  { %618 = vst [vmem:[%s871_s4 + $0x18] sm:$0xff] %v594_v11   ;;  %v589_v14 = vpack.c.bf16 %v424_v12, %v423_v10  ;;  %v389_v17 = vadd.f32 %v535_v49, %v388_v13  ;;  %v429_v20 = vmax.f32 %v397_v15, 0.0 }
 0x1c0   :  { %v714_v16 = vpop.f32.mrf.mxu1 }
 0x1c1   :  { %617 = vst [vmem:[%s871_s4 + $0x10] sm:$0xff] %v589_v14   ;;  %v400_v18 = vadd.f32 %v714_v16, %v535_v49  ;;  %v427_v24 = vmax.f32 %v389_v17, 0.0 }
 0x1c2   :  { %v391_v19 = vpop.f32.mrf.mxu1 }
 0x1c3   :  { %v430_v21 = vmax.f32 %v400_v18, 0.0  ;;  %v392_v22 = vadd.f32 %v535_v49, %v391_v19 }
 0x1c4   :  { %v717_v23 = vpop.f32.mrf.mxu1 }
 0x1c5   :  { %v604_v25 = vpack.c.bf16 %v430_v21, %v429_v20  ;;  %v428_v26 = vmax.f32 %v392_v22, 0.0  ;;  %v413_v29 = vadd.f32 %v717_v23, %v535_v49 }
 0x1c6   :  { %v404_v27 = vpop.f32.mrf.mxu1 }
 0x1c7   :  { %620 = vst [vmem:[%s871_s4 + $0x28] sm:$0xff] %v604_v25   ;;  %v599_v28 = vpack.c.bf16 %v428_v26, %v427_v24  ;;  %v405_v31 = vadd.f32 %v535_v49, %v404_v27  ;;  %v433_v34 = vmax.f32 %v413_v29, 0.0 }
 0x1c8   :  { %v718_v30 = vpop.f32.mrf.mxu1 }
 0x1c9   :  { %619 = vst [vmem:[%s871_s4 + $0x20] sm:$0xff] %v599_v28   ;;  %v416_v32 = vadd.f32 %v718_v30, %v535_v49  ;;  %v431_v37 = vmax.f32 %v405_v31, 0.0 }
 0x1ca   :  { %v407_v33 = vpop.f32.mrf.mxu1 }
 0x1cb   :  { %v434_v35 = vmax.f32 %v416_v32, 0.0  ;;  %v408_v36 = vadd.f32 %v535_v49, %v407_v33 }
 0x1cd   :  { %v614_v38 = vpack.c.bf16 %v434_v35, %v433_v34  ;;  %v432_v39 = vmax.f32 %v408_v36, 0.0 }
 0x1cf   :  { %622 = vst [vmem:[%s871_s4 + $0x38] sm:$0xff] %v614_v38   ;;  %v609_v40 = vpack.c.bf16 %v432_v39, %v431_v37 }
 0x1d1   :  { %621 = vst [vmem:[%s871_s4 + $0x30] sm:$0xff] %v609_v40  }

</bundles_post_ra>
